<compile_context>
chip_gen: v7x
topology: tpu7x:2x2x1
jax: 0.10.0
libtpu: 0.0.40
codegen_flags: <defaults>
</compile_context>

<pallas_src>
import math
from functools import partial

import jax
import jax.numpy as jnp
from jax.experimental import pallas as pl
from jax.experimental.pallas import tpu as pltpu


def _attention_fusion_kernel(x_ref, o_ref, *, n, c, inv_sqrt_dim):
    # x_ref block: (N, C, S, 128)   o_ref block: (C, S, 128)
    # All work below is per-(sublane, lane) elementwise VPU math; nothing ever
    # reduces across lanes, so garbage in (discarded) tail lanes cannot leak.

    # ---- scores[j](p) = (1/sqrt(C)) * sum_c x[0,c,p] * x[j,c,p] -----------------
    # Unrolled accumulation over the small static channel axis: no big temporaries.
    # NOTE(scaling): cav_num <= C in practice, so scaling the n score maps is the
    # cheaper placement of 1/sqrt(C) (vs. folding it into the C query channels).
    scores = [None] * n
    for cc in range(c):
        q = x_ref[0, cc].astype(jnp.float32)                 # (S, 128)
        for j in range(n):
            prod = q * x_ref[j, cc].astype(jnp.float32)
            scores[j] = prod if scores[j] is None else scores[j] + prod
    scores = [s * inv_sqrt_dim for s in scores]

    # ---- softmax over the agent axis (per spatial position) ---------------------
    m = scores[0]
    for j in range(1, n):
        m = jnp.maximum(m, scores[j])
    e = [jnp.exp(s - m) for s in scores]
    denom = e[0]
    for j in range(1, n):
        denom = denom + e[j]
    inv = 1.0 / denom            # exact reciprocal (approx=True was too coarse)
    attn = [ej * inv for ej in e]                            # (S, 128) each

    # ---- context(c, p) = sum_j attn[j](p) * x[j,c,p] -----------------------------
    # For large cav_num the scores/e/attn live set grows as 3n blocks; strip-mining
    # the S axis with an unrolled fori_loop would bound it, but at n<=8 it fits.
    for cc in range(c):
        acc = attn[0] * x_ref[0, cc].astype(jnp.float32)
        for j in range(1, n):
            acc = acc + attn[j] * x_ref[j, cc].astype(jnp.float32)
        o_ref[cc] = acc.astype(o_ref.dtype)


def _choose_tile_rows(n, c, rows, itemsize, vmem_budget_bytes):
    """Spatial tile size in 128-lane rows (the sublane axis of each block)."""
    # VMEM per spatial row: double-buffered input + output blocks (I/O dtype) plus
    # the f32 softmax intermediates (scores / exp / attn / accumulator).
    per_row = 128 * (2 * n * c * itemsize + 2 * c * itemsize + 4 * (3 * n + c + 2))
    cap = (int(vmem_budget_bytes // per_row) // 8) * 8
    cap = max(8, min(512, cap))            # >512 rows: past HBM roofline, no gain
    if rows % 8 != 0:
        if rows <= cap:
            # Small / ragged sublane extent: one full-extent block (block == full dim
            # is always legal) -> no host-side padding, grid of 1.
            return rows
        # Large + ragged: multiple-of-8 tile; Pallas masks the partial tail block
        # (OOB reads are unspecified, OOB writes dropped) and every op is per-lane,
        # so the tail garbage never reaches kept output positions.
        return cap
    # rows is a multiple of 8: largest multiple-of-8 divisor <= cap, preferring a
    # grid of >= 2 steps so both v7x TensorCores get work.
    best = 8
    for t in range(8, min(cap, rows) + 1, 8):
        if rows % t == 0 and (rows // t >= 2 or rows <= 8):
            best = t
    return best


def attention_fusion(x, *, vmem_budget_bytes=32 * 1024 * 1024):
    """x: (cav_num, C, H, W) -> (C, H, W)  (AttentionFusion.forward)."""
    n, c, h, w = x.shape
    hw = h * w
    rows = pl.cdiv(hw, 128)                # spatial rows of 128 lanes
    hw128 = rows * 128

    x_flat = x.reshape(n, c, hw)
    if hw128 != hw:
        # Lane-dense layout needs HW % 128 == 0; pad only the <128-element remainder.
        x_flat = jnp.pad(x_flat, ((0, 0), (0, 0), (0, hw128 - hw)))
    x4 = x_flat.reshape(n, c, rows, 128)   # spatial on (sublane, lane)

    itemsize = x.dtype.itemsize
    tile_s = _choose_tile_rows(n, c, rows, itemsize, vmem_budget_bytes)
    grid = (pl.cdiv(rows, tile_s),)

    inv_sqrt_dim = 1.0 / math.sqrt(float(c))
    kernel = partial(_attention_fusion_kernel, n=n, c=c, inv_sqrt_dim=inv_sqrt_dim)

    cost = pl.CostEstimate(
        flops=int((4 * n * c + 8 * n) * hw128),
        transcendentals=int(n * hw128),
        bytes_accessed=int(itemsize * (n * c + c) * hw128),
    )

    out4 = pl.pallas_call(
        kernel,
        out_shape=jax.ShapeDtypeStruct((c, rows, 128), x.dtype),
        grid_spec=pltpu.PrefetchScalarGridSpec(
            num_scalar_prefetch=0,
            grid=grid,
            in_specs=[pl.BlockSpec((n, c, tile_s, 128), lambda i: (0, 0, i, 0))],
            out_specs=pl.BlockSpec((c, tile_s, 128), lambda i: (0, i, 0)),
        ),
        compiler_params=pltpu.CompilerParams(
            dimension_semantics=("parallel",),     # spatial axis sharded across TCs (v7x)
            vmem_limit_bytes=48 * 1024 * 1024,     # explicit; headroom vs v7x 64 MiB
        ),
        cost_estimate=cost,
    )(x4)

    out_flat = out4.reshape(c, hw128)
    if hw128 != hw:
        out_flat = out_flat[:, :hw]
    return out_flat.reshape(c, h, w)


def _reference(x):
    """Pure-JAX replica of the PyTorch forward (full attention, keep [0])."""
    n, c, h, w = x.shape
    xt = x.reshape(n, c, h * w).transpose(2, 0, 1)            # (HW, N, C)
    score = jnp.einsum('pnc,pmc->pnm', xt, xt) / math.sqrt(float(c))
    attn = jax.nn.softmax(score, axis=-1)
    ctx = jnp.einsum('pnm,pmc->pnc', attn, xt)                # (HW, N, C)
    out = ctx.transpose(1, 2, 0).reshape(n, c, h, w)[0]       # (C, H, W)
    return out


if __name__ == "__main__":
    key = jax.random.PRNGKey(0)
    cav_num, C, H, W = 2, 4, 16, 16
    x = jax.random.normal(key, (cav_num, C, H, W), dtype=jnp.float32)

    out = attention_fusion(x)
    jax.block_until_ready(out)

    ref = _reference(x)
    assert out.shape == (C, H, W)
    assert jnp.allclose(out, ref, atol=1e-4, rtol=1e-4), "mismatch vs reference"

    print("KERNEL_OK")
</pallas_src>

<mosaic_0001>
module attributes {stable_mosaic.version = 11 : i64} {
  func.func @_attention_fusion_kernel(%arg0: i32, %arg1: memref<2x4x2x128xf32, #tpu.memory_space<vmem>>, %arg2: memref<4x2x128xf32, #tpu.memory_space<vmem>>) attributes {dimension_semantics = [#tpu.dimension_semantics<parallel>], iteration_bounds = array<i64: 1>, scalar_prefetch = 0 : i64, scratch_operands = 0 : i64, tpu.core_type = #tpu.core_type<tc>, window_params = [{transform_indices = @transform_0, window_bounds = array<i64: 2, 4, 2, 128>}, {transform_indices = @transform_1, window_bounds = array<i64: 4, 2, 128>}]} {
    %c0 = arith.constant 0 : index
    %c0_0 = arith.constant 0 : index
    %c0_1 = arith.constant 0 : index
    %c0_2 = arith.constant 0 : index
    %0 = vector.load %arg1[%c0, %c0_0, %c0_1, %c0_2] : memref<2x4x2x128xf32, #tpu.memory_space<vmem>>, vector<1x1x2x128xf32>
    %1 = vector.shape_cast %0 : vector<1x1x2x128xf32> to vector<2x128xf32>
    %c0_3 = arith.constant 0 : index
    %c0_4 = arith.constant 0 : index
    %c0_5 = arith.constant 0 : index
    %c0_6 = arith.constant 0 : index
    %2 = vector.load %arg1[%c0_3, %c0_4, %c0_5, %c0_6] : memref<2x4x2x128xf32, #tpu.memory_space<vmem>>, vector<1x1x2x128xf32>
    %3 = vector.shape_cast %2 : vector<1x1x2x128xf32> to vector<2x128xf32>
    %4 = arith.mulf %1, %3 : vector<2x128xf32>
    %c1 = arith.constant 1 : index
    %c0_7 = arith.constant 0 : index
    %c0_8 = arith.constant 0 : index
    %c0_9 = arith.constant 0 : index
    %5 = vector.load %arg1[%c1, %c0_7, %c0_8, %c0_9] : memref<2x4x2x128xf32, #tpu.memory_space<vmem>>, vector<1x1x2x128xf32>
    %6 = vector.shape_cast %5 : vector<1x1x2x128xf32> to vector<2x128xf32>
    %7 = arith.mulf %1, %6 : vector<2x128xf32>
    %c0_10 = arith.constant 0 : index
    %c1_11 = arith.constant 1 : index
    %c0_12 = arith.constant 0 : index
    %c0_13 = arith.constant 0 : index
    %8 = vector.load %arg1[%c0_10, %c1_11, %c0_12, %c0_13] : memref<2x4x2x128xf32, #tpu.memory_space<vmem>>, vector<1x1x2x128xf32>
    %9 = vector.shape_cast %8 : vector<1x1x2x128xf32> to vector<2x128xf32>
    %c0_14 = arith.constant 0 : index
    %c1_15 = arith.constant 1 : index
    %c0_16 = arith.constant 0 : index
    %c0_17 = arith.constant 0 : index
    %10 = vector.load %arg1[%c0_14, %c1_15, %c0_16, %c0_17] : memref<2x4x2x128xf32, #tpu.memory_space<vmem>>, vector<1x1x2x128xf32>
    %11 = vector.shape_cast %10 : vector<1x1x2x128xf32> to vector<2x128xf32>
    %12 = arith.mulf %9, %11 : vector<2x128xf32>
    %13 = arith.addf %4, %12 : vector<2x128xf32>
    %c1_18 = arith.constant 1 : index
    %c1_19 = arith.constant 1 : index
    %c0_20 = arith.constant 0 : index
    %c0_21 = arith.constant 0 : index
    %14 = vector.load %arg1[%c1_18, %c1_19, %c0_20, %c0_21] : memref<2x4x2x128xf32, #tpu.memory_space<vmem>>, vector<1x1x2x128xf32>
    %15 = vector.shape_cast %14 : vector<1x1x2x128xf32> to vector<2x128xf32>
    %16 = arith.mulf %9, %15 : vector<2x128xf32>
    %17 = arith.addf %7, %16 : vector<2x128xf32>
    %c0_22 = arith.constant 0 : index
    %c2 = arith.constant 2 : index
    %c0_23 = arith.constant 0 : index
    %c0_24 = arith.constant 0 : index
    %18 = vector.load %arg1[%c0_22, %c2, %c0_23, %c0_24] : memref<2x4x2x128xf32, #tpu.memory_space<vmem>>, vector<1x1x2x128xf32>
    %19 = vector.shape_cast %18 : vector<1x1x2x128xf32> to vector<2x128xf32>
    %c0_25 = arith.constant 0 : index
    %c2_26 = arith.constant 2 : index
    %c0_27 = arith.constant 0 : index
    %c0_28 = arith.constant 0 : index
    %20 = vector.load %arg1[%c0_25, %c2_26, %c0_27, %c0_28] : memref<2x4x2x128xf32, #tpu.memory_space<vmem>>, vector<1x1x2x128xf32>
    %21 = vector.shape_cast %20 : vector<1x1x2x128xf32> to vector<2x128xf32>
    %22 = arith.mulf %19, %21 : vector<2x128xf32>
    %23 = arith.addf %13, %22 : vector<2x128xf32>
    %c1_29 = arith.constant 1 : index
    %c2_30 = arith.constant 2 : index
    %c0_31 = arith.constant 0 : index
    %c0_32 = arith.constant 0 : index
    %24 = vector.load %arg1[%c1_29, %c2_30, %c0_31, %c0_32] : memref<2x4x2x128xf32, #tpu.memory_space<vmem>>, vector<1x1x2x128xf32>
    %25 = vector.shape_cast %24 : vector<1x1x2x128xf32> to vector<2x128xf32>
    %26 = arith.mulf %19, %25 : vector<2x128xf32>
    %27 = arith.addf %17, %26 : vector<2x128xf32>
    %c0_33 = arith.constant 0 : index
    %c3 = arith.constant 3 : index
    %c0_34 = arith.constant 0 : index
    %c0_35 = arith.constant 0 : index
    %28 = vector.load %arg1[%c0_33, %c3, %c0_34, %c0_35] : memref<2x4x2x128xf32, #tpu.memory_space<vmem>>, vector<1x1x2x128xf32>
    %29 = vector.shape_cast %28 : vector<1x1x2x128xf32> to vector<2x128xf32>
    %c0_36 = arith.constant 0 : index
    %c3_37 = arith.constant 3 : index
    %c0_38 = arith.constant 0 : index
    %c0_39 = arith.constant 0 : index
    %30 = vector.load %arg1[%c0_36, %c3_37, %c0_38, %c0_39] : memref<2x4x2x128xf32, #tpu.memory_space<vmem>>, vector<1x1x2x128xf32>
    %31 = vector.shape_cast %30 : vector<1x1x2x128xf32> to vector<2x128xf32>
    %32 = arith.mulf %29, %31 : vector<2x128xf32>
    %33 = arith.addf %23, %32 : vector<2x128xf32>
    %c1_40 = arith.constant 1 : index
    %c3_41 = arith.constant 3 : index
    %c0_42 = arith.constant 0 : index
    %c0_43 = arith.constant 0 : index
    %34 = vector.load %arg1[%c1_40, %c3_41, %c0_42, %c0_43] : memref<2x4x2x128xf32, #tpu.memory_space<vmem>>, vector<1x1x2x128xf32>
    %35 = vector.shape_cast %34 : vector<1x1x2x128xf32> to vector<2x128xf32>
    %36 = arith.mulf %29, %35 : vector<2x128xf32>
    %37 = arith.addf %27, %36 : vector<2x128xf32>
    %cst = arith.constant 5.000000e-01 : f32
    %38 = vector.broadcast %cst : f32 to vector<2x128xf32>
    %39 = arith.mulf %33, %38 : vector<2x128xf32>
    %cst_44 = arith.constant 5.000000e-01 : f32
    %40 = vector.broadcast %cst_44 : f32 to vector<2x128xf32>
    %41 = arith.mulf %37, %40 : vector<2x128xf32>
    %42 = arith.maximumf %39, %41 : vector<2x128xf32>
    %43 = arith.subf %39, %42 : vector<2x128xf32>
    %44 = math.exp %43 : vector<2x128xf32>
    %45 = arith.subf %41, %42 : vector<2x128xf32>
    %46 = math.exp %45 : vector<2x128xf32>
    %47 = arith.addf %44, %46 : vector<2x128xf32>
    %cst_45 = arith.constant 1.000000e+00 : f32
    %48 = vector.broadcast %cst_45 : f32 to vector<2x128xf32>
    %49 = arith.divf %48, %47 : vector<2x128xf32>
    %50 = arith.mulf %44, %49 : vector<2x128xf32>
    %51 = arith.mulf %46, %49 : vector<2x128xf32>
    %c0_46 = arith.constant 0 : index
    %c0_47 = arith.constant 0 : index
    %c0_48 = arith.constant 0 : index
    %c0_49 = arith.constant 0 : index
    %52 = vector.load %arg1[%c0_46, %c0_47, %c0_48, %c0_49] : memref<2x4x2x128xf32, #tpu.memory_space<vmem>>, vector<1x1x2x128xf32>
    %53 = vector.shape_cast %52 : vector<1x1x2x128xf32> to vector<2x128xf32>
    %54 = arith.mulf %50, %53 : vector<2x128xf32>
    %c1_50 = arith.constant 1 : index
    %c0_51 = arith.constant 0 : index
    %c0_52 = arith.constant 0 : index
    %c0_53 = arith.constant 0 : index
    %55 = vector.load %arg1[%c1_50, %c0_51, %c0_52, %c0_53] : memref<2x4x2x128xf32, #tpu.memory_space<vmem>>, vector<1x1x2x128xf32>
    %56 = vector.shape_cast %55 : vector<1x1x2x128xf32> to vector<2x128xf32>
    %57 = arith.mulf %51, %56 : vector<2x128xf32>
    %58 = arith.addf %54, %57 : vector<2x128xf32>
    %c0_54 = arith.constant 0 : index
    %c0_55 = arith.constant 0 : index
    %c0_56 = arith.constant 0 : index
    %59 = vector.load %arg2[%c0_54, %c0_55, %c0_56] : memref<4x2x128xf32, #tpu.memory_space<vmem>>, vector<1x2x128xf32>
    %60 = vector.shape_cast %59 : vector<1x2x128xf32> to vector<2x128xf32>
    %61 = vector.shape_cast %58 : vector<2x128xf32> to vector<1x2x128xf32>
    tpu.vector_store %arg2[%c0_54, %c0_55, %c0_56], %61 {strides = array<i32>} : memref<4x2x128xf32, #tpu.memory_space<vmem>>, vector<1x2x128xf32>,
    %c0_57 = arith.constant 0 : index
    %c1_58 = arith.constant 1 : index
    %c0_59 = arith.constant 0 : index
    %c0_60 = arith.constant 0 : index
    %62 = vector.load %arg1[%c0_57, %c1_58, %c0_59, %c0_60] : memref<2x4x2x128xf32, #tpu.memory_space<vmem>>, vector<1x1x2x128xf32>
    %63 = vector.shape_cast %62 : vector<1x1x2x128xf32> to vector<2x128xf32>
    %64 = arith.mulf %50, %63 : vector<2x128xf32>
    %c1_61 = arith.constant 1 : index
    %c1_62 = arith.constant 1 : index
    %c0_63 = arith.constant 0 : index
    %c0_64 = arith.constant 0 : index
    %65 = vector.load %arg1[%c1_61, %c1_62, %c0_63, %c0_64] : memref<2x4x2x128xf32, #tpu.memory_space<vmem>>, vector<1x1x2x128xf32>
    %66 = vector.shape_cast %65 : vector<1x1x2x128xf32> to vector<2x128xf32>
    %67 = arith.mulf %51, %66 : vector<2x128xf32>
    %68 = arith.addf %64, %67 : vector<2x128xf32>
    %c1_65 = arith.constant 1 : index
    %c0_66 = arith.constant 0 : index
    %c0_67 = arith.constant 0 : index
    %69 = vector.load %arg2[%c1_65, %c0_66, %c0_67] : memref<4x2x128xf32, #tpu.memory_space<vmem>>, vector<1x2x128xf32>
    %70 = vector.shape_cast %69 : vector<1x2x128xf32> to vector<2x128xf32>
    %71 = vector.shape_cast %68 : vector<2x128xf32> to vector<1x2x128xf32>
    tpu.vector_store %arg2[%c1_65, %c0_66, %c0_67], %71 {strides = array<i32>} : memref<4x2x128xf32, #tpu.memory_space<vmem>>, vector<1x2x128xf32>,
    %c0_68 = arith.constant 0 : index
    %c2_69 = arith.constant 2 : index
    %c0_70 = arith.constant 0 : index
    %c0_71 = arith.constant 0 : index
    %72 = vector.load %arg1[%c0_68, %c2_69, %c0_70, %c0_71] : memref<2x4x2x128xf32, #tpu.memory_space<vmem>>, vector<1x1x2x128xf32>
    %73 = vector.shape_cast %72 : vector<1x1x2x128xf32> to vector<2x128xf32>
    %74 = arith.mulf %50, %73 : vector<2x128xf32>
    %c1_72 = arith.constant 1 : index
    %c2_73 = arith.constant 2 : index
    %c0_74 = arith.constant 0 : index
    %c0_75 = arith.constant 0 : index
    %75 = vector.load %arg1[%c1_72, %c2_73, %c0_74, %c0_75] : memref<2x4x2x128xf32, #tpu.memory_space<vmem>>, vector<1x1x2x128xf32>
    %76 = vector.shape_cast %75 : vector<1x1x2x128xf32> to vector<2x128xf32>
    %77 = arith.mulf %51, %76 : vector<2x128xf32>
    %78 = arith.addf %74, %77 : vector<2x128xf32>
    %c2_76 = arith.constant 2 : index
    %c0_77 = arith.constant 0 : index
    %c0_78 = arith.constant 0 : index
    %79 = vector.load %arg2[%c2_76, %c0_77, %c0_78] : memref<4x2x128xf32, #tpu.memory_space<vmem>>, vector<1x2x128xf32>
    %80 = vector.shape_cast %79 : vector<1x2x128xf32> to vector<2x128xf32>
    %81 = vector.shape_cast %78 : vector<2x128xf32> to vector<1x2x128xf32>
    tpu.vector_store %arg2[%c2_76, %c0_77, %c0_78], %81 {strides = array<i32>} : memref<4x2x128xf32, #tpu.memory_space<vmem>>, vector<1x2x128xf32>,
    %c0_79 = arith.constant 0 : index
    %c3_80 = arith.constant 3 : index
    %c0_81 = arith.constant 0 : index
    %c0_82 = arith.constant 0 : index
    %82 = vector.load %arg1[%c0_79, %c3_80, %c0_81, %c0_82] : memref<2x4x2x128xf32, #tpu.memory_space<vmem>>, vector<1x1x2x128xf32>
    %83 = vector.shape_cast %82 : vector<1x1x2x128xf32> to vector<2x128xf32>
    %84 = arith.mulf %50, %83 : vector<2x128xf32>
    %c1_83 = arith.constant 1 : index
    %c3_84 = arith.constant 3 : index
    %c0_85 = arith.constant 0 : index
    %c0_86 = arith.constant 0 : index
    %85 = vector.load %arg1[%c1_83, %c3_84, %c0_85, %c0_86] : memref<2x4x2x128xf32, #tpu.memory_space<vmem>>, vector<1x1x2x128xf32>
    %86 = vector.shape_cast %85 : vector<1x1x2x128xf32> to vector<2x128xf32>
    %87 = arith.mulf %51, %86 : vector<2x128xf32>
    %88 = arith.addf %84, %87 : vector<2x128xf32>
    %c3_87 = arith.constant 3 : index
    %c0_88 = arith.constant 0 : index
    %c0_89 = arith.constant 0 : index
    %89 = vector.load %arg2[%c3_87, %c0_88, %c0_89] : memref<4x2x128xf32, #tpu.memory_space<vmem>>, vector<1x2x128xf32>
    %90 = vector.shape_cast %89 : vector<1x2x128xf32> to vector<2x128xf32>
    %91 = vector.shape_cast %88 : vector<2x128xf32> to vector<1x2x128xf32>
    tpu.vector_store %arg2[%c3_87, %c0_88, %c0_89], %91 {strides = array<i32>} : memref<4x2x128xf32, #tpu.memory_space<vmem>>, vector<1x2x128xf32>,
    return
  }
  func.func @transform_0(%arg0: i32) -> (i32, i32, i32, i32) {
    %c0_i32 = arith.constant 0 : i32
    %c0_i32_0 = arith.constant 0 : i32
    %c0_i32_1 = arith.constant 0 : i32
    %c0_i32_2 = arith.constant 0 : i32
    return %c0_i32, %c0_i32_0, %arg0, %c0_i32_1 : i32, i32, i32, i32
  }
  func.func @transform_1(%arg0: i32) -> (i32, i32, i32) {
    %c0_i32 = arith.constant 0 : i32
    %c0_i32_0 = arith.constant 0 : i32
    %c0_i32_1 = arith.constant 0 : i32
    return %c0_i32, %arg0, %c0_i32_0 : i32, i32, i32
  }
}

</mosaic_0001>

<bundles_post_ra>
// kernel: tpu_custom_call.1
= control target key start
LH: loop header
LB: loop body
LE: loop exit
PB: predicated region body
PF: predicated region fallthrough
CT: control target
= control target key end

     0   :  { %6 = vsyncpa [#allocation3], 0  ;;  %s210_s0 = inlined_call_operand.hbm [shape: f32[2,4,2,128], index: 0, kind: input, shape index: {}]   ;;  %s211_s1 = inlined_call_operand.hbm [shape: f32[4,2,128], index: 1, kind: output, shape index: {}]  }
   0x1   :  { %7 = vsyncpa [#allocation4], 0  ;;  %s166_s6 = smov [#allocation2]   ;;  %s118_s10 = scalar_lea.hbm %s210_s0, 256 }
   0x2   :  { %s13_s7 = sshll.u32 %s166_s6, 4  ;;  %p119_p0 = scmp.ne.s32.totalorder %s210_s0, %s118_s10  ;;  %s14_s7 = int_to_ptr.vmem [resolvable:$true] %s13_s7 }
   0x3   :  { %p122_p1 = scmp.lt.u32.totalorder %s118_s10, %s210_s0 }
   0x5   :  { %p124_p2 = pnand %p122_p1, %p119_p0 }
   0x7   :  { %127 = shalt.err (!%p124_p2)
}
   0x8   :  { %s128_s15 = scalar_lea.vmem %s14_s7, 256  ;;  %p133_p4 = scmp.lt.s32.totalorder %s14_s7, %s14_s7 }
   0x9   :  { %p129_p3 = scmp.ne.s32.totalorder %s14_s7, %s128_s15  ;;  %p134_p5 = scmp.lt.s32.totalorder %s128_s15, %s128_s15 }
   0xb   :  { %p135_p6 = por %p134_p5, %p133_p4 }
   0xd   :  { %p136_p7 = pnand %p135_p6, %p129_p3 }
   0xf   :  { %139 = shalt.err (!%p136_p7)
}
  0x10   :  { %s167_s16 = smov 32   ;;  %s168_s17 = smov 2  }
  0x11   :  { %19 = dma.hbm_to_vmem [thread:$0]  %s210_s0, 256, %s14_s7, [#allocation3], %s167_s16, %s167_s16, %s168_s17  }
  0x12   :  { %162 = dma.done.wait [#allocation3], 256  }
  0x13   :  { %163 = vsyncadd [#allocation3], 4294967040  ;;  %v23_v0 = vld [vmem:[#allocation2] sm:$0x3]  ;;  %v26_v1 = vld [vmem:[#allocation2 + $0x8] sm:$0x3] }
  0x14   :  { %v29_v2 = vld [vmem:[#allocation2 + $0x2] sm:$0x3]  ;;  %v24_v3 = vmul.f32 %v23_v0, %v23_v0  ;;  %v27_v4 = vmul.f32 %v26_v1, %v23_v0  ;;  %v33_v6 = vld [vmem:[#allocation2 + $0xa] sm:$0x3]  ;;  %v37_v7 = vld [vmem:[#allocation2 + $0x4] sm:$0x3] }
  0x15   :  { %v30_v5 = vmul.f32 %v29_v2, %v29_v2  ;;  %v41_v8 = vld [vmem:[#allocation2 + $0xc] sm:$0x3]  ;;  %v34_v9 = vmul.f32 %v33_v6, %v29_v2  ;;  %v38_v10 = vmul.f32 %v37_v7, %v37_v7  ;;  %v45_v12 = vld [vmem:[#allocation2 + $0x6] sm:$0x3]  ;;  %v49_v13 = vld [vmem:[#allocation2 + $0xe] sm:$0x3] }
  0x16   :  { %v42_v11 = vmul.f32 %v41_v8, %v37_v7  ;;  %v46_v15 = vmul.f32 %v45_v12, %v45_v12  ;;  %v50_v17 = vmul.f32 %v49_v13, %v45_v12  ;;  %v70_v33 = vld [vmem:[#allocation2 + $0x2] sm:$0x3]  ;;  %v72_v34 = vld [vmem:[#allocation2 + $0xa] sm:$0x3]  ;;  %v77_v35 = vld [vmem:[#allocation2 + $0x4] sm:$0x3] }
  0x17   :  { %v31_v14 = vadd.f32 %v30_v5, %v24_v3  ;;  %v35_v16 = vadd.f32 %v34_v9, %v27_v4  ;;  %v79_v38 = vld [vmem:[#allocation2 + $0xc] sm:$0x3]  ;;  %v84_v39 = vld [vmem:[#allocation2 + $0x6] sm:$0x3]  ;;  %v86_v40 = vld [vmem:[#allocation2 + $0xe] sm:$0x3] }
  0x18   :  { %s169_s0 = smov [#allocation5]  }
  0x19   :  { %v39_v18 = vadd.f32 %v38_v10, %v31_v14  ;;  %v43_v19 = vadd.f32 %v42_v11, %v35_v16  ;;  %s96_s20 = sshll.u32 %s169_s0, 4  ;;  %s97_s20 = int_to_ptr.vmem [resolvable:$true] %s96_s20 }
  0x1a   :  { %s140_s21 = scalar_lea.vmem %s97_s20, 128  ;;  %p145_p9 = scmp.lt.s32.totalorder %s97_s20, %s97_s20 }
  0x1b   :  { %v47_v20 = vadd.f32 %v46_v15, %v39_v18  ;;  %v51_v21 = vadd.f32 %v50_v17, %v43_v19  ;;  %p141_p8 = scmp.ne.s32.totalorder %s97_s20, %s140_s21  ;;  %p146_p10 = scmp.lt.s32.totalorder %s140_s21, %s140_s21 }
  0x1d   :  { %v52_v22 = vmul.f32 0.5, %v47_v20  ;;  %v53_v23 = vmul.f32 0.5, %v51_v21  ;;  %p147_p11 = por %p146_p10, %p145_p9 }
  0x1f   :  { %v54_v24 = vmax.f32 %v52_v22, %v53_v23  ;;  %p148_p12 = pnand %p147_p11, %p141_p8 }
  0x21   :  { %v55_v25 = vsub.f32 %v52_v22, %v54_v24  ;;  %v58_v26 = vsub.f32 %v53_v23, %v54_v24 }
  0x23   :  { %v56_v27 = vmul.f32 1.442695, %v55_v25  ;;  %v59_v28 = vmul.f32 1.442695, %v58_v26 }
  0x25   :  { %112 = vpow2.f32 %v56_v27 }
  0x26   :  { %114 = vpow2.f32 %v59_v28 }
  0x2f   :  { %v113_v29 = vpop.eup %112 }
  0x30   :  { %v115_v30 = vpop.eup %114 }
  0x31   :  { %v61_v31 = vadd.f32 %v115_v30, %v113_v29 }
  0x33   :  { %116 = vrcp.f32 %v61_v31 }
  0x3d   :  { %v117_v32 = vpop.eup %116 }
  0x3e   :  { %v64_v36 = vmul.f32 %v117_v32, %v113_v29  ;;  %v65_v37 = vmul.f32 %v117_v32, %v115_v30 }
  0x40   :  { %v66_v41 = vmul.f32 %v64_v36, %v23_v0  ;;  %v67_v42 = vmul.f32 %v65_v37, %v26_v1  ;;  %v71_v43 = vmul.f32 %v70_v33, %v64_v36  ;;  %v73_v44 = vmul.f32 %v72_v34, %v65_v37 }
  0x41   :  { %v78_v45 = vmul.f32 %v77_v35, %v64_v36  ;;  %v80_v46 = vmul.f32 %v79_v38, %v65_v37  ;;  %v85_v47 = vmul.f32 %v84_v39, %v64_v36  ;;  %v87_v48 = vmul.f32 %v86_v40, %v65_v37 }
  0x42   :  { %v68_v49 = vadd.f32 %v67_v42, %v66_v41  ;;  %v74_v50 = vadd.f32 %v73_v44, %v71_v43 }
  0x43   :  { %v81_v51 = vadd.f32 %v80_v46, %v78_v45  ;;  %v88_v52 = vadd.f32 %v87_v48, %v85_v47 }
  0x44   :  { %69 = vst [vmem:[#allocation5] sm:$0x3] %v68_v49  ;;  %76 = vst [vmem:[#allocation5 + $0x2] sm:$0x3] %v74_v50 }
  0x45   :  { %83 = vst [vmem:[#allocation5 + $0x4] sm:$0x3] %v81_v51  ;;  %90 = vst [vmem:[#allocation5 + $0x6] sm:$0x3] %v88_v52 }
  0x46   :  { %151 = shalt.err (!%p148_p12)
}
  0x47   :  { %s152_s24 = scalar_lea.hbm %s211_s1, 128 }
  0x48   :  { %p153_p13 = scmp.ne.s32.totalorder %s211_s1, %s152_s24  ;;  %p156_p0 = scmp.lt.u32.totalorder %s152_s24, %s211_s1 }
  0x4a   :  { %p158_p1 = pnand %p156_p0, %p153_p13 }
  0x4c   :  { %161 = shalt.err (!%p158_p1)
}
  0x4d   :  { %102 = dma.vmem_to_hbm [thread:$0]  %s97_s20, 128, %s211_s1, [#allocation4], %s167_s16, %s167_s16, %s168_s17  }
  0x4e   :  { %164 = dma.done.wait [#allocation4], 128  }
  0x4f   :  { %165 = vsyncadd [#allocation4], 4294967168 }
  0x50   :  { %106 = vsyncpa [#allocation3], 1 }
  0x51   :  { %107 = vsyncpa [#allocation4], 1 }

</bundles_post_ra>
